<compile_context>
chip_gen: v7x
topology: tpu7x:2x2x1
jax: 0.10.0
libtpu: 0.0.40
codegen_flags: <defaults>
</compile_context>

<pallas_src>
import functools

import jax
import jax.numpy as jnp
from jax.experimental import pallas as pl
from jax.experimental.pallas import tpu as pltpu


def _round_up(a, m):
    return ((a + m - 1) // m) * m


def _tpe_kernel(x_ref, coef_ref, phase_ref, inv_ref, o_ref, *, d_input):
    # x_ref     : (TB, D)    VMEM
    # coef_ref  : (D, Wp)    VMEM (constant across grid steps)
    # phase_ref : (1, Wp)    VMEM (constant; 0 on sin cols, pi/2 on cos cols)
    # inv_ref   : (1, Wp)    VMEM (constant; 1/scale on valid cols, 0 on pad)
    # o_ref     : (TB, Wp)   VMEM, lane-dense output slab (Wp % 128 == 0)
    x = x_ref[...]                                   # (TB, D)
    coef = coef_ref[...]                             # (D, Wp)

    # enc[b, w] = x[b, w mod D] * scale_flat[w], built as D rank-1 broadcasts
    # (masked terms are exact zeros, so enc matches torch's x*scale bit-exactly).
    enc = x[:, 0:1] * coef[0:1, :]                   # (TB, Wp)
    for d in range(1, d_input):
        enc = enc + x[:, d:d + 1] * coef[d:d + 1, :]

    # Phase-fold: single sin pass covers both sin and cos columns.
    out = jnp.sin(enc + phase_ref[...]) * inv_ref[...]
    o_ref[...] = out.astype(o_ref.dtype)             # full-width unmasked store


def trainable_positional_encoding(x, frequencies, *, block_b=4096, out_dtype=None):
    """x: (B, d_input); frequencies: (n_freqs, d_input) (or (1, F, D)) f32 param.

    Returns (B, n_freqs * 2 * d_input) with the same row layout as the PyTorch
    forward: per frequency f, [sin(x*s_f)/s_f (D cols), cos(x*s_f)/s_f (D cols)].
    """
    if frequencies.ndim == 3:            # accept the module's (1, F, D) param
        frequencies = frequencies[0]
    B, D = x.shape
    F, D2 = frequencies.shape
    assert D == D2, (D, D2)
    W = F * 2 * D
    Wp = _round_up(W, 128)               # lane-dense, unmasked stores
    out_dtype = x.dtype if out_dtype is None else out_dtype

    f32 = jnp.float32
    scale = jnp.pi * (2.0 ** frequencies.astype(f32))                  # (F, D)
    # Column w -> (f = w // (2D), j = w % (2D)); sin if j < D else cos; d = w % D.
    scale_flat = jnp.concatenate([scale, scale], axis=-1).reshape(W)   # (W,)
    pad = Wp - W
    scale_pad = (jnp.concatenate([scale_flat, jnp.ones((pad,), f32)])
                 if pad else scale_flat)                               # (Wp,)

    col = jnp.arange(Wp)
    valid = col < W
    coef = jnp.where(((col[None, :] % D) == jnp.arange(D)[:, None]) & valid[None, :],
                     scale_pad[None, :], 0.0).astype(f32)              # (D, Wp)
    is_sin = (col % (2 * D)) < D
    phase = jnp.where(is_sin | ~valid, 0.0, jnp.pi / 2)[None, :].astype(f32)  # (1, Wp)
    inv = jnp.where(valid, 1.0 / scale_pad, 0.0)[None, :].astype(f32)         # (1, Wp)

    # Batch tile: big enough to amortize per-step overhead, but capped at
    # ceil(B/2) so the grid has >= 2 steps (v7x megacore gets both TCs busy).
    TB = max(8, min(block_b, _round_up(max(pl.cdiv(B, 2), 1), 8)))
    B_pad = _round_up(B, TB)
    if B_pad != B:
        x = jnp.pad(x, ((0, B_pad - B), (0, 0)))     # zero rows; sliced off below
    grid = (B_pad // TB,)
    kernel = functools.partial(_tpe_kernel, d_input=D)

    out = pl.pallas_call(
        kernel,
        out_shape=jax.ShapeDtypeStruct((B_pad, Wp), out_dtype),
        grid_spec=pltpu.PrefetchScalarGridSpec(
            num_scalar_prefetch=0,
            grid=grid,
            in_specs=[
                pl.BlockSpec((TB, D), lambda i: (i, 0)),    # batch tile of x
                pl.BlockSpec((D, Wp), lambda i: (0, 0)),    # constants, resident
                pl.BlockSpec((1, Wp), lambda i: (0, 0)),
                pl.BlockSpec((1, Wp), lambda i: (0, 0)),
            ],
            out_specs=pl.BlockSpec((TB, Wp), lambda i: (i, 0)),
        ),
        compiler_params=pltpu.CompilerParams(
            dimension_semantics=("parallel",)),             # v7x: shard batch over 2 TCs
    )(x, coef, phase, inv)

    return out[:B, :W]


def _reference(x, frequencies):
    # Pure-JAX reference mirroring the PyTorch module exactly.
    scale = jnp.pi * (2.0 ** frequencies)[None, :, :]          # (1, F, D)
    enc = x[:, None, :] * scale                                # (B, F, D)
    out = jnp.concatenate([jnp.sin(enc) / scale,
                           jnp.cos(enc) / scale], axis=-1)     # (B, F, 2D)
    return out.reshape(x.shape[0], -1)


if __name__ == "__main__":
    d_input = 3        # (x, y, z) positions
    n_freqs = 20       # module default

    key = jax.random.PRNGKey(0)
    # Deterministic parameter init, same as the module's __init__:
    # stack of linspace(-3, 9, n_freqs) per input dim -> (n_freqs, d_input)
    frequencies = jnp.broadcast_to(
        jnp.linspace(-3.0, 9.0, n_freqs, dtype=jnp.float32)[:, None],
        (n_freqs, d_input),
    )

    tpe = jax.jit(trainable_positional_encoding,
                  static_argnames=("block_b", "out_dtype"))

    # Small single-tile case (batch=8).
    x_small = jax.random.normal(key, (8, d_input), dtype=jnp.float32)
    out = jax.block_until_ready(tpe(x_small, frequencies))
    ref = _reference(x_small, frequencies)
    assert out.shape == (8, n_freqs * 2 * d_input), out.shape
    assert jnp.allclose(out, ref, atol=1e-5, rtol=1e-5), float(
        jnp.max(jnp.abs(out - ref)))

    # Multi-tile, non-divisible batch exercising the pipelined grid + padding
    # (B=37, TB=8 -> B_pad=40, grid=5).
    x_big = jax.random.normal(jax.random.PRNGKey(1), (37, d_input),
                              dtype=jnp.float32)
    out_b = jax.block_until_ready(tpe(x_big, frequencies, block_b=8))
    ref_b = _reference(x_big, frequencies)
    assert out_b.shape == (37, n_freqs * 2 * d_input), out_b.shape
    assert jnp.allclose(out_b, ref_b, atol=1e-5, rtol=1e-5), float(
        jnp.max(jnp.abs(out_b - ref_b)))

    print("KERNEL_OK")
</pallas_src>

<mosaic_0001>
module attributes {stable_mosaic.version = 11 : i64} {
  func.func @_tpe_kernel(%arg0: i32, %arg1: memref<8x3xf32, #tpu.memory_space<vmem>>, %arg2: memref<3x128xf32, #tpu.memory_space<vmem>>, %arg3: memref<1x128xf32, #tpu.memory_space<vmem>>, %arg4: memref<1x128xf32, #tpu.memory_space<vmem>>, %arg5: memref<8x128xf32, #tpu.memory_space<vmem>>) attributes {dimension_semantics = [#tpu.dimension_semantics<parallel>], iteration_bounds = array<i64: 1>, scalar_prefetch = 0 : i64, scratch_operands = 0 : i64, tpu.core_type = #tpu.core_type<tc>, window_params = [{transform_indices = @transform_0, window_bounds = array<i64: 8, 3>}, {pipeline_mode = #tpu.pipeline_mode<synchronous>, transform_indices = @transform_1, window_bounds = array<i64: 3, 128>}, {pipeline_mode = #tpu.pipeline_mode<synchronous>, transform_indices = @transform_2, window_bounds = array<i64: 1, 128>}, {pipeline_mode = #tpu.pipeline_mode<synchronous>, transform_indices = @transform_3, window_bounds = array<i64: 1, 128>}, {transform_indices = @transform_4, window_bounds = array<i64: 8, 128>}]} {
    %c0 = arith.constant 0 : index
    %c0_0 = arith.constant 0 : index
    %0 = vector.load %arg1[%c0, %c0_0] : memref<8x3xf32, #tpu.memory_space<vmem>>, vector<8x3xf32>
    %c0_1 = arith.constant 0 : index
    %c0_2 = arith.constant 0 : index
    %1 = vector.load %arg2[%c0_1, %c0_2] : memref<3x128xf32, #tpu.memory_space<vmem>>, vector<3x128xf32>
    %2 = vector.extract_strided_slice %0 {offsets = [0, 0], sizes = [8, 1], strides = [1, 1]} : vector<8x3xf32> to vector<8x1xf32>
    %3 = vector.extract_strided_slice %1 {offsets = [0, 0], sizes = [1, 128], strides = [1, 1]} : vector<3x128xf32> to vector<1x128xf32>
    %4 = vector.broadcast %2 : vector<8x1xf32> to vector<8x128xf32>
    %5 = vector.broadcast %3 : vector<1x128xf32> to vector<8x128xf32>
    %6 = arith.mulf %4, %5 : vector<8x128xf32>
    %7 = vector.extract_strided_slice %0 {offsets = [0, 1], sizes = [8, 1], strides = [1, 1]} : vector<8x3xf32> to vector<8x1xf32>
    %8 = vector.extract_strided_slice %1 {offsets = [1, 0], sizes = [1, 128], strides = [1, 1]} : vector<3x128xf32> to vector<1x128xf32>
    %9 = vector.broadcast %7 : vector<8x1xf32> to vector<8x128xf32>
    %10 = vector.broadcast %8 : vector<1x128xf32> to vector<8x128xf32>
    %11 = arith.mulf %9, %10 : vector<8x128xf32>
    %12 = arith.addf %6, %11 : vector<8x128xf32>
    %13 = vector.extract_strided_slice %0 {offsets = [0, 2], sizes = [8, 1], strides = [1, 1]} : vector<8x3xf32> to vector<8x1xf32>
    %14 = vector.extract_strided_slice %1 {offsets = [2, 0], sizes = [1, 128], strides = [1, 1]} : vector<3x128xf32> to vector<1x128xf32>
    %15 = vector.broadcast %13 : vector<8x1xf32> to vector<8x128xf32>
    %16 = vector.broadcast %14 : vector<1x128xf32> to vector<8x128xf32>
    %17 = arith.mulf %15, %16 : vector<8x128xf32>
    %18 = arith.addf %12, %17 : vector<8x128xf32>
    %c0_3 = arith.constant 0 : index
    %c0_4 = arith.constant 0 : index
    %19 = vector.load %arg3[%c0_3, %c0_4] : memref<1x128xf32, #tpu.memory_space<vmem>>, vector<1x128xf32>
    %20 = vector.broadcast %19 : vector<1x128xf32> to vector<8x128xf32>
    %21 = arith.addf %18, %20 : vector<8x128xf32>
    %22 = math.sin %21 : vector<8x128xf32>
    %c0_5 = arith.constant 0 : index
    %c0_6 = arith.constant 0 : index
    %23 = vector.load %arg4[%c0_5, %c0_6] : memref<1x128xf32, #tpu.memory_space<vmem>>, vector<1x128xf32>
    %24 = vector.broadcast %23 : vector<1x128xf32> to vector<8x128xf32>
    %25 = arith.mulf %22, %24 : vector<8x128xf32>
    %c0_7 = arith.constant 0 : index
    %c0_8 = arith.constant 0 : index
    %26 = vector.load %arg5[%c0_7, %c0_8] : memref<8x128xf32, #tpu.memory_space<vmem>>, vector<8x128xf32>
    tpu.vector_store %arg5[%c0_7, %c0_8], %25 {strides = array<i32>} : memref<8x128xf32, #tpu.memory_space<vmem>>, vector<8x128xf32>,
    return
  }
  func.func @transform_0(%arg0: i32) -> (i32, i32) {
    %c0_i32 = arith.constant 0 : i32
    %c0_i32_0 = arith.constant 0 : i32
    return %arg0, %c0_i32 : i32, i32
  }
  func.func @transform_1(%arg0: i32) -> (i32, i32) {
    %c0_i32 = arith.constant 0 : i32
    %c0_i32_0 = arith.constant 0 : i32
    %c0_i32_1 = arith.constant 0 : i32
    return %c0_i32, %c0_i32_0 : i32, i32
  }
  func.func @transform_2(%arg0: i32) -> (i32, i32) {
    %c0_i32 = arith.constant 0 : i32
    %c0_i32_0 = arith.constant 0 : i32
    %c0_i32_1 = arith.constant 0 : i32
    return %c0_i32, %c0_i32_0 : i32, i32
  }
  func.func @transform_3(%arg0: i32) -> (i32, i32) {
    %c0_i32 = arith.constant 0 : i32
    %c0_i32_0 = arith.constant 0 : i32
    %c0_i32_1 = arith.constant 0 : i32
    return %c0_i32, %c0_i32_0 : i32, i32
  }
  func.func @transform_4(%arg0: i32) -> (i32, i32) {
    %c0_i32 = arith.constant 0 : i32
    %c0_i32_0 = arith.constant 0 : i32
    return %arg0, %c0_i32 : i32, i32
  }
}

</mosaic_0001>

<bundles_post_ra>
// kernel: trainable_positional_encoding.1
= control target key start
LH: loop header
LB: loop body
LE: loop exit
PB: predicated region body
PF: predicated region fallthrough
CT: control target
= control target key end

     0   :  { %v237_v1 = vmov 0   ;;  %v238_v2 = vmov 2   ;;  %s317_s0 = inlined_call_operand.vmem [shape: f32[8,3], index: 0, kind: input, shape index: {}]   ;;  %s318_s1 = inlined_call_operand.vmem [shape: f32[3,128], index: 1, kind: input, shape index: {}]   ;;  %s319_s2 = inlined_call_operand.vmem [shape: f32[1,128], index: 2, kind: input, shape index: {}]   ;;  %s320_s3 = inlined_call_operand.vmem [shape: f32[1,128], index: 3, kind: input, shape index: {}]   ;;  %s321_s4 = inlined_call_operand.hbm [shape: f32[8,128], index: 4, kind: output, shape index: {}]  }
   0x1   :  { %v18_v0 = vld [vmem:[%s317_s0] sm:$0xff]  ;;  %205 = vset.pattern.permute.xlu0 %v237_v1  ;;  %207 = vset.pattern.permute.xlu1 %v238_v2 }
   0x2   :  { %9 = vsyncpa [#allocation3], 0  ;;  %22 = vperm.xlu0 %205, %v18_v0   ;;  %41 = vperm.xlu1 %207, %v18_v0   ;;  %v239_v3 = vmov 1   ;;  %v25_v4 = vlaneseq  ;;  %v19_v9 = vld [vmem:[%s318_s1] sm:$0x7]  ;;  %s246_s20 = smov [#allocation2]  }
   0x3   :  { %v185_v20 = vld [vmem:[%s319_s2] ss:$0 sm:$0xff]  ;;  %v240_v33 = vmov 683565275   ;;  %v241_v35 = vmov 2475754826  }
   0x4   :  { %v26_v5 = vshrl.u32 %v25_v4, 7  ;;  %v242_v38 = vmov 2131351028   ;;  %v243_v41 = vmov 2102212464   ;;  %s177_s21 = sshll.u32 %s246_s20, 4  ;;  %s178_s21 = int_to_ptr.vmem [resolvable:$true] %s177_s21 }
   0x5   :  { %v244_v44 = vmov 920167782   ;;  %v245_v47 = vmov 1326507024   ;;  %s213_s22 = scalar_lea.vmem %s178_s21, 128  ;;  %p218_p1 = scmp.lt.s32.totalorder %s178_s21, %s178_s21 }
   0x6   :  { %206 = vset.pattern.permute.xlu0 %v239_v3  ;;  %v27_v6 = vsub.s32 0, %v26_v5  ;;  %v36_v7 = vsub.s32 1, %v26_v5  ;;  %v46_v8 = vsub.s32 2, %v26_v5  ;;  %p214_p0 = scmp.ne.s32.totalorder %s178_s21, %s213_s22  ;;  %p219_p2 = scmp.lt.s32.totalorder %s213_s22, %s213_s22 }
   0x7   :  { %31 = vperm.xlu0 %206, %v18_v0  }
   0x8   :  { %v28_v11 = vrot.slane %v19_v9, %v27_v6  ;;  %v37_v12 = vrot.slane %v19_v9, %v36_v7  ;;  %v47_v13 = vrot.slane %v19_v9, %v46_v8  ;;  %p220_p3 = por %p219_p2, %p218_p1 }
   0xa   :  { %p221_p4 = pnand %p220_p3, %p214_p0 }
   0xb   :  { %208 = vset.pattern.permute.xlu0 %v238_v2 }
  0x81   :  { %v23_v10 = vpop.permute.xlu0 %22  ;;  %v42_v14 = vpop.permute.xlu1 %41 }
  0x82   :  { %v29_v16 = vmul.f32 %v28_v11, %v23_v10  ;;  %v48_v18 = vmul.f32 %v47_v13, %v42_v14 }
  0x86   :  { %v32_v15 = vpop.permute.xlu0 %31 }
  0x87   :  { %v38_v17 = vmul.f32 %v37_v12, %v32_v15 }
  0x89   :  { %v39_v19 = vadd.f32 %v38_v17, %v29_v16 }
  0x8b   :  { %v49_v21 = vadd.f32 %v48_v18, %v39_v19 }
  0x8d   :  { %v281_v22 = vadd.f32 %v185_v20, %v49_v21 }
  0x8f   :  { %v61_v23 = vand.u32 2139095040, %v281_v22  ;;  %v58_v27 = vand.u32 2147483647, %v281_v22  ;;  %vm60_vm7 = vcmp.lt.s32.totalorder %v281_v22, 0  ;;  %vm150_vm12 = vweird.f32 %v281_v22 }
  0x91   :  { %v62_v24 = vshrl.u32 %v61_v23, 23  ;;  %v65_v31 = vand.u32 8388607, %v58_v27  ;;  %vm59_vm8 = vcmp.le.f32.partialorder %v58_v27, 0.7853982 }
  0x92   :  { %v190_v27 = vld [vmem:[%s320_s3] ss:$0 sm:$0xff] }
  0x93   :  { %v186_v25 = vadd.s32 4294967169, %v62_v24  ;;  %v66_v49 = vor.u32 8388608, %v65_v31 }
  0x95   :  { %v68_v26 = vadd.s32 1, %v186_v25  ;;  %v106_v63 = vshll.u32 %v66_v49, 8 }
  0x97   :  { %vm69_vm0 = vcmp.gt.s32.totalorder %v68_v26, 0 }
  0x98   :  { %v70_v28 = vsel %vm69_vm0, %v68_v26, 0 }
  0x99   :  { %v72_v29 = vand.u32 31, %v70_v28  ;;  %v71_v32 = vshrl.u32 %v70_v28, 5 }
  0x9b   :  { %v73_v30 = vsub.s32 32, %v72_v29  ;;  %v75_v34 = vshll.u32 %v240_v33, %v72_v29  ;;  %v78_v36 = vshll.u32 %v241_v35, %v72_v29  ;;  %v81_v40 = vshll.u32 %v242_v38, %v72_v29 }
  0x9c   :  { %v84_v43 = vshll.u32 %v243_v41, %v72_v29  ;;  %v87_v46 = vshll.u32 %v244_v44, %v72_v29  ;;  %vm90_vm1 = vcmp.lt.s32.totalorder %v71_v32, 1  ;;  %vm93_vm2 = vcmp.lt.s32.totalorder %v71_v32, 4 }
  0x9d   :  { %v76_v37 = vshrl.u32 %v241_v35, %v73_v30  ;;  %v79_v39 = vshrl.u32 %v242_v38, %v73_v30  ;;  %v82_v42 = vshrl.u32 %v243_v41, %v73_v30  ;;  %v85_v45 = vshrl.u32 %v244_v44, %v73_v30 }
  0x9e   :  { %v88_v48 = vshrl.u32 %v245_v47, %v73_v30  ;;  %v74_v58 = vshrl.u32 %v240_v33, %v73_v30  ;;  %vm92_vm3 = vcmp.lt.s32.totalorder %v71_v32, 3  ;;  %vm91_vm4 = vcmp.lt.s32.totalorder %v71_v32, 2 }
  0x9f   :  { %v77_v50 = vor.u32 %v76_v37, %v75_v34  ;;  %v80_v51 = vor.u32 %v79_v39, %v78_v36  ;;  %v83_v52 = vor.u32 %v82_v42, %v81_v40  ;;  %v86_v53 = vor.u32 %v85_v45, %v84_v43 }
  0xa0   :  { %v89_v54 = vor.u32 %v88_v48, %v87_v46 }
  0xa1   :  { %v95_v55 = vsel %vm93_vm2, %v83_v52, 2102212464  ;;  %v98_v56 = vsel %vm90_vm1, %v77_v50, %v80_v51  ;;  %v102_v57 = vsel %vm90_vm1, %v80_v51, %v83_v52  ;;  %v99_v59 = vsel %vm93_vm2, %v86_v53, 920167782 }
  0xa2   :  { %v103_v60 = vsel %vm93_vm2, %v89_v54, 1326507024  ;;  %v100_v61 = vsel %vm92_vm3, %v83_v52, %v99_v59  ;;  %v94_v0 = vsel %vm90_vm1, %v74_v58, %v77_v50  ;;  %v96_v1 = vsel %vm92_vm3, %v80_v51, %v95_v55 }
  0xa3   :  { %v104_v62 = vsel %vm92_vm3, %v86_v53, %v103_v60  ;;  %v101_v2 = vsel %vm91_vm4, %v98_v56, %v100_v61  ;;  %v97_v8 = vsel %vm91_vm4, %v94_v0, %v96_v1 }
  0xa4   :  { %v105_v3 = vsel %vm91_vm4, %v102_v57, %v104_v62  ;;  %v290_v6 = vmul.u32.u64.low %v106_v63, %v101_v2  ;;  %v291_v7 = vmul.u32.u64.high %v106_v63, %v101_v2, %v290_v6  ;;  %v113_v10 = vmul.u32 %v106_v63, %v97_v8 }
  0xa5   :  { %v287_v4 = vmul.u32.u64.low %v106_v63, %v105_v3  ;;  %v288_v5 = vmul.u32.u64.high %v106_v63, %v105_v3, %v287_v4 }
  0xa6   :  { %v116_v9 = vadd.s32 1, %v291_v7 }
  0xa7   :  { %vm115_vm5 = vc.u32 %v288_v5, %v290_v6  ;;  %v114_v23 = vadd.s32 %v290_v6, %v288_v5 }
  0xa8   :  { %v117_v11 = vsel %vm115_vm5, %v116_v9, %v291_v7 }
  0xa9   :  { %v118_v12 = vadd.s32 %v117_v11, %v113_v10 }
  0xab   :  { %v119_v13 = vadd.s32 536870912, %v118_v12 }
  0xad   :  { %v120_v14 = vshrl.u32 %v119_v13, 30 }
  0xaf   :  { %v121_v15 = vshll.u32 %v120_v14, 30  ;;  %v144_v36 = vsub.s32 4, %v120_v14 }
  0xb1   :  { %v122_v16 = vsub.s32 %v118_v12, %v121_v15  ;;  %v145_v39 = vsel %vm60_vm7, %v144_v36, %v120_v14 }
  0xb2   :  { %v147_v41 = vsel %vm59_vm8, 0, %v145_v39 }
  0xb3   :  { %v124_v17 = vsub.s32 0, %v122_v16  ;;  %v151_v42 = vadd.s32 3, %v147_v41 }
  0xb5   :  { %v187_v18 = vmin.u32 %v124_v17, %v122_v16  ;;  %v152_v43 = vand.u32 3, %v151_v42 }
  0xb7   :  { %v126_v19 = vclz %v187_v18  ;;  %vm157_vm9 = vcmp.eq.s32.totalorder %v152_v43, 2  ;;  %vm154_vm10 = vcmp.eq.s32.totalorder %v152_v43, 0  ;;  %vm153_vm11 = vcmp.lt.s32.totalorder %v152_v43, 2 }
  0xb9   :  { %v188_v20 = vadd.s32 4294967294, %v126_v19 }
  0xbb   :  { %vm189_vm6 = vcmp.lt.s32.totalorder %v188_v20, 0 }
  0xbc   :  { %v129_v21 = vsel %vm189_vm6, 0, %v188_v20 }
  0xbd   :  { %v130_v24 = vsub.s32 32, %v129_v21  ;;  %v134_v25 = vsub.s32 4294967266, %v129_v21  ;;  %v131_v26 = vshll.u32 %v122_v16, %v129_v21 }
  0xbf   :  { %v132_v28 = vshrl.u32 %v114_v23, %v130_v24  ;;  %v135_v29 = vadd.s32 127, %v134_v25 }
  0xc1   :  { %v133_v30 = vor.u32 %v132_v28, %v131_v26  ;;  %v136_v31 = vshll.u32 %v135_v29, 23 }
  0xc3   :  { %v137_v32 = vor.u32 4788187, %v136_v31  ;;  %v140_v34 = vcvt.s32.f32 %v133_v30 }
  0xc5   :  { %v138_v33 = vand.u32 2147483647, %v137_v32 }
  0xc7   :  { %v141_v35 = vmul.f32 %v140_v34, %v138_v33 }
  0xc9   :  { %v142_v37 = vxor.u32 2147483648, %v141_v35 }
  0xcb   :  { %v143_v38 = vsel %vm60_vm7, %v142_v37, %v141_v35 }
  0xcc   :  { %v146_v40 = vsel %vm59_vm8, %v281_v22, %v143_v38 }
  0xcd   :  { %209 = vcosq.f32 %v146_v40 }
  0xce   :  { %211 = vsinq.f32 %v146_v40 }
  0xd7   :  { %v210_v44 = vpop.eup %209 }
  0xd8   :  { %v212_v45 = vpop.eup %211  ;;  %v158_v46 = vxor.u32 2147483648, %v210_v44 }
  0xd9   :  { %v155_v47 = vxor.u32 2147483648, %v212_v45 }
  0xda   :  { %v159_v48 = vsel %vm157_vm9, %v158_v46, %v212_v45 }
  0xdb   :  { %v156_v49 = vsel %vm154_vm10, %v210_v44, %v155_v47 }
  0xdc   :  { %v160_v50 = vsel %vm153_vm11, %v156_v49, %v159_v48 }
  0xdd   :  { %v161_v51 = vsel %vm150_vm12, nan, %v160_v50 }
  0xde   :  { %v169_v52 = vmul.f32 %v190_v27, %v161_v51 }
  0xe0   :  { %170 = vst [vmem:[#allocation2] sm:$0xff] %v169_v52 }
  0xe1   :  { %224 = shalt.err (!%p221_p4)
}
  0xe2   :  { %s225_s3 = scalar_lea.hbm %s321_s4, 128 }
  0xe3   :  { %p226_p5 = scmp.ne.s32.totalorder %s321_s4, %s225_s3  ;;  %p229_p6 = scmp.lt.u32.totalorder %s225_s3, %s321_s4 }
  0xe5   :  { %p231_p7 = pnand %p229_p6, %p226_p5 }
  0xe7   :  { %234 = shalt.err (!%p231_p7)
}
  0xe8   :  { %180 = dma.vmem_to_hbm [thread:$0]  %s178_s21, 128, %s321_s4, [#allocation3]  }
  0xe9   :  { %235 = dma.done.wait [#allocation3], 128  }
  0xea   :  { %236 = vsyncadd [#allocation3], 4294967168 }
  0xeb   :  { %184 = vsyncpa [#allocation3], 1 }

</bundles_post_ra>
